<compile_context>
chip_gen: v6e
topology: v6e:2x2x1
jax: 0.10.0
libtpu: 0.0.40
codegen_flags: <defaults>
</compile_context>

<pallas_src>
import functools

import jax
import jax.numpy as jnp
from jax.experimental import pallas as pl
from jax.experimental.pallas import tpu as pltpu

_LANE = 128
_MAX_BATCH_TILE = 16  # cap on unrolled per-batch permutes inside one block


def _channel_shuffle_kernel(x_ref, o_ref, *, groups, cpg):
    # x_ref / o_ref: (bt, C, thw) VMEM tiles for one (batch-tile, spatial-tile)
    # grid cell.  The shuffle is a pure sublane-row permutation
    #     out[c2 * groups + g] = x[g * cpg + c2]
    # done as one whole-tile reshape/swapaxes per batch element, so every
    # load/store is a full-width (lane-dense) vreg op.
    bt, c, thw = o_ref.shape
    for b in range(bt):  # bt is a small static int -> fully unrolled
        xb = x_ref[b]                                          # (C, thw)
        o_ref[b] = xb.reshape(groups, cpg, thw).swapaxes(0, 1).reshape(c, thw)


def _choose_tiling(B, C, HW, itemsize, vmem_budget_bytes):
    """Pick (batch_tile, lane_tile) so 2-in + 2-out buffers fit the budget."""
    block_budget = max(vmem_budget_bytes // 4, C * _LANE * itemsize)
    hw_lanes = pl.cdiv(HW, _LANE)

    # Lane tile: largest multiple of 128 within the per-block budget (never
    # larger than the rounded-up spatial extent).  The grid uses cdiv, so no
    # divisibility requirement and no tile-shrinking fallback.
    max_thw_lanes = max(1, block_budget // (C * itemsize * _LANE))
    thw = min(hw_lanes, max_thw_lanes) * _LANE

    # Batch tile: if one lane tile already covers the whole spatial axis and
    # the block is still small (tiny early-stage layers), pack several batch
    # elements per grid step so DMAs stay MiB-scale.
    bt = 1
    if thw >= HW:
        per_batch = C * thw * itemsize
        bt = int(min(B, _MAX_BATCH_TILE, max(1, block_budget // per_batch)))

    # Keep at least 2 grid cells when possible (v7x runs 2 TensorCores).
    if pl.cdiv(B, bt) * pl.cdiv(HW, thw) < 2:
        if B > 1:
            bt = (B + 1) // 2
        elif hw_lanes > 1:
            thw = ((hw_lanes + 1) // 2) * _LANE
    return bt, thw


def channel_shuffle(x, groups, *, vmem_budget_bytes=32 * 1024 * 1024):
    """Equivalent of PyTorch ChannelShuffle.forward on an NCHW tensor."""
    B, C, H, W = x.shape
    assert C % groups == 0, "channels must be divisible by groups"
    cpg = C // groups
    HW = H * W
    itemsize = jnp.dtype(x.dtype).itemsize

    bt, thw = _choose_tiling(B, C, HW, itemsize, vmem_budget_bytes)
    n_b = pl.cdiv(B, bt)
    n_hw = pl.cdiv(HW, thw)

    block_bytes = bt * C * thw * itemsize
    # 2 input + 2 output double-buffers, plus a little compiler headroom.
    vmem_limit = int(min(max(4 * block_bytes + (4 << 20), 16 << 20), 100 << 20))

    kernel = functools.partial(_channel_shuffle_kernel, groups=groups, cpg=cpg)

    xr = x.reshape(B, C, HW)  # contiguous NCHW -> (B, C, HW): metadata only

    out = pl.pallas_call(
        kernel,
        out_shape=jax.ShapeDtypeStruct((B, C, HW), x.dtype),
        grid=(n_b, n_hw),
        in_specs=[pl.BlockSpec((bt, C, thw), lambda i, j: (i, 0, j))],
        out_specs=pl.BlockSpec((bt, C, thw), lambda i, j: (i, 0, j)),
        compiler_params=pltpu.CompilerParams(
            dimension_semantics=("parallel", "parallel"),
            vmem_limit_bytes=vmem_limit),
        cost_estimate=pl.CostEstimate(
            flops=0,
            transcendentals=0,
            bytes_accessed=2 * B * C * HW * itemsize),
    )(xr)

    return out.reshape(B, C, H, W)


def channel_shuffle_ref(x, groups):
    # Pure-JAX reference reproducing the PyTorch semantics exactly.
    B, C, H, W = x.shape
    cpg = C // groups
    y = x.reshape(B, groups, cpg, H, W)
    y = jnp.transpose(y, (0, 2, 1, 3, 4))
    return y.reshape(B, C, H, W)


if __name__ == "__main__":
    key = jax.random.PRNGKey(0)
    B, C, H, W = 2, 4, 16, 16
    groups = 2

    x = jax.random.normal(key, (B, C, H, W), dtype=jnp.float32)

    out = jax.block_until_ready(channel_shuffle(x, groups))
    ref = channel_shuffle_ref(x, groups)

    assert out.shape == ref.shape and out.dtype == ref.dtype
    assert jnp.array_equal(out, ref), "Pallas channel shuffle mismatch"

    print("KERNEL_OK")
</pallas_src>

<mosaic_0001>
module attributes {stable_mosaic.version = 11 : i64} {
  func.func @_channel_shuffle_kernel(%arg0: i32, %arg1: i32, %arg2: memref<1x4x256xf32, #tpu.memory_space<vmem>>, %arg3: memref<1x4x256xf32, #tpu.memory_space<vmem>>) attributes {dimension_semantics = [#tpu.dimension_semantics<parallel>, #tpu.dimension_semantics<parallel>], iteration_bounds = array<i64: 2, 1>, scalar_prefetch = 0 : i64, scratch_operands = 0 : i64, tpu.core_type = #tpu.core_type<tc>, window_params = [{transform_indices = @transform_0, window_bounds = array<i64: 1, 4, 256>}, {transform_indices = @transform_1, window_bounds = array<i64: 1, 4, 256>}]} {
    %c0 = arith.constant 0 : index
    %c0_0 = arith.constant 0 : index
    %c0_1 = arith.constant 0 : index
    %0 = vector.load %arg2[%c0, %c0_0, %c0_1] : memref<1x4x256xf32, #tpu.memory_space<vmem>>, vector<1x4x256xf32>
    %1 = vector.shape_cast %0 : vector<1x4x256xf32> to vector<4x256xf32>
    %2 = vector.shape_cast %1 : vector<4x256xf32> to vector<2x2x256xf32>
    %3 = tpu.transpose %2, [1, 0, 2] : vector<2x2x256xf32> -> vector<2x2x256xf32>
    %4 = vector.shape_cast %3 : vector<2x2x256xf32> to vector<4x256xf32>
    %c0_2 = arith.constant 0 : index
    %c0_3 = arith.constant 0 : index
    %c0_4 = arith.constant 0 : index
    %5 = vector.load %arg3[%c0_2, %c0_3, %c0_4] : memref<1x4x256xf32, #tpu.memory_space<vmem>>, vector<1x4x256xf32>
    %6 = vector.shape_cast %5 : vector<1x4x256xf32> to vector<4x256xf32>
    %7 = vector.shape_cast %4 : vector<4x256xf32> to vector<1x4x256xf32>
    tpu.vector_store %arg3[%c0_2, %c0_3, %c0_4], %7 {strides = array<i32>} : memref<1x4x256xf32, #tpu.memory_space<vmem>>, vector<1x4x256xf32>,
    return
  }
  func.func @transform_0(%arg0: i32, %arg1: i32) -> (i32, i32, i32) {
    %c0_i32 = arith.constant 0 : i32
    %c0_i32_0 = arith.constant 0 : i32
    return %arg0, %c0_i32, %arg1 : i32, i32, i32
  }
  func.func @transform_1(%arg0: i32, %arg1: i32) -> (i32, i32, i32) {
    %c0_i32 = arith.constant 0 : i32
    %c0_i32_0 = arith.constant 0 : i32
    return %arg0, %c0_i32, %arg1 : i32, i32, i32
  }
}

</mosaic_0001>

<bundles_post_ra>
// kernel: tpu_custom_call.1
= control target key start
LH: loop header
LB: loop body
LE: loop exit
PB: predicated region body
PF: predicated region fallthrough
CT: control target
= control target key end

     0   :  { %6 = vsyncpa [#allocation3], 0  ;;  %s628_s0 = inlined_call_operand.hbm [shape: f32[2,4,256], index: 0, kind: input, shape index: {}]   ;;  %s629_s1 = inlined_call_operand.hbm [shape: f32[2,4,256], index: 1, kind: output, shape index: {}]  }
   0x1   :  { %8 = vsyncpa [#allocation3 + $0x1], 0 }
   0x2   :  { %9 = vsyncpa [#allocation4], 0 }
   0x3   :  { %11 = vsyncpa [#allocation4 + $0x1], 0  ;;  %s494_s6 = smov 0   ;;  %s496_s7 = smov 0  }
   0x4   :  { %s498_s8 = smov 0   ;;  %s500_s9 = smov 0  }
   0x5   :  { %s502_s10 = smov 0   ;;  %s504_s11 = smov 0  }
   0x6 LB: > { %s287_s12 = sadd.s32 4294967295, %s478_s11   ;;  %s288_s13 = sadd.s32 4294967294, %s478_s11   ;;  %s478_s11 = sphi %s504_s11, %s17_s11   ;;  %s474_s10 = sphi %s502_s10, %s641_s10   ;;  %s470_s9 = sphi %s500_s9, %s640_s9   ;;  %s466_s8 = sphi %s498_s8, %s639_s8   ;;  %s462_s7 = sphi %s496_s7, %s638_s7   ;;  %s458_s6 = sphi %s494_s6, %s637_s6  }
   0x7   : > { %s29_s14 = sadd.s32 1, %s474_s10  ;;  %s38_s15 = sadd.s32 1, %s466_s8 }
   0x8   : > { %p31_p0 = scmp.ge.s32.totalorder %s29_s14, 2  ;;  %p45_p1 = scmp.ne.s32.totalorder %s466_s8, %s462_s7 }
   0x9   : > { %p46_p2 = scmp.eq.s32.totalorder %s478_s11, 0  ;;  %p51_p3 = scmp.ne.s32.totalorder %s462_s7, %s458_s6 }
   0xa   : > { %s643_s14 = smov (%p31_p0, %s29_s14), 0  ;;  %p52_p5 = scmp.eq.s32.totalorder %s287_s12, 0 }
   0xb   : > { %p535_p4 = por %p46_p2, %p45_p1  ;;  %s33_s17 = ssub.s32 %s474_s10, %s643_s14 }
   0xc   : > { %p77_p6 = scmp.eq.s32.totalorder %s287_s12, 1  ;;  %p36_p7 = scmp.eq.s32.totalorder %s33_s17, 0 }
   0xd   : > { %p541_p8 = por %p52_p5, %p51_p3  ;;  %p83_p10 = scmp.eq.s32.totalorder %s288_s13, 1 }
   0xe   : > { %p545_p9 = por %p77_p6, %p45_p1  ;;  %p318_p13 = scmp.lt.s32.totalorder %s478_s11, 2 }
   0xf   : > { %s550_s20 = scalar_select %p36_p7, %s466_s8, %s38_s15  }
  0x10   : > { %p552_p11 = por %p83_p10, %p51_p3  ;;  %s103_s22 = sand.u32 1, %s466_s8  }
  0x11   : > { %s291_s23 = sshll.u32 %s103_s22, 3  ;;  %s304_s24 = sshll.u32 %s474_s10, 7 }
  0x12   : > { %s633_s21 = scalar_select %p552_p11, 1, 0 }
  0x13   : > { %s115_s27 = scalar_lea.hbm %s628_s0, %s304_s24  ;;  %s107_s28 = scalar_lea.vmem [#allocation2], %s291_s23 }
  0x14   : > { %s117_s29 = sshll.u32 %s107_s28, 4  ;;  %p565_p0 = pnand %p318_p13, %p535_p4  ;;  %s118_s29 = int_to_ptr.vmem [resolvable:$true] %s117_s29 }
  0x15   : > { %p294_p1 = scmp.ge.s32.totalorder %s478_s11, 1  ;;  %p122_p2 = scmp.lt.s32.totalorder %s478_s11, 3 }
  0x16   : > { %s104_s2 = scalar_lea.sflag [#allocation3], %s103_s22  ;;  %p372_p3 = pneg %p565_p0 }
  0x17   : > { %s383_s3 = scalar_lea.vmem %s118_s29, 128  ;;  %s480_s4 = smov [#allocation2]  }
  0x18   : > { %p384_p5 = scmp.ne.s32.totalorder %s118_s29, %s383_s3  ;;  %s388_s5 = sshll.u32 %s480_s4, 4  ;;  %s389_s5 = int_to_ptr.vmem [resolvable:$false] %s388_s5 }
  0x19   : > { %s390_s12 = scalar_lea.vmem %s389_s5, 256  ;;  %p391_p10 = scmp.lt.s32.totalorder %s118_s29, %s389_s5 }
  0x1a   : > { %p386_p6 = pnand %p384_p5, %p372_p3  ;;  %p392_p12 = scmp.lt.s32.totalorder %s390_s12, %s383_s3 }
  0x1c   : > { %p387_p7 = pneg %p386_p6  ;;  %p393_p4 = por %p392_p12, %p391_p10 }
  0x1e   : > { %p394_p13 = pnand %p393_p4, %p387_p7 }
  0x20   : > { %397 = shalt.err (!%p394_p13)
}
  0x21   : > { %313 = dma.hbm_to_vmem [thread:$0]  (!%p565_p0), %s115_s27, 128, %s118_s29, %s104_s2  }
  0x22   : > { %p123_p11 = pnand %p294_p1, %p122_p2 }
  0x23   : > { %s580_s13 = sand.u32 (!%p123_p11), 1, %s462_s7  }
  0x24   : > { %126 = sbr.rel (%p123_p11) target bundleno = 68 (0x44), region = 24  ;;  %s295_s15 = sshll.u32 (!%p123_p11), %s580_s13, 3 }
  0x25   : > { %s129_s16 = scalar_lea.sflag (!%p123_p11), [#allocation3], %s580_s13  ;;  %s132_s17 = scalar_lea.vmem (!%p123_p11), [#allocation2], %s295_s15 }
  0x29   : > { %449 = dma.done.wait (%p541_p8), %s129_s16, 128  }
  0x2a   : > { %451 = vsyncadd (%p541_p8), %s129_s16, 4294967168  ;;  %v169_v0 = vlaneseq  ;;  %v481_v1 = vmov 1934713408   ;;  %v297_v5 = vld.sshfl [vmem:[%s132_s17] sm:$0xff pattern:$0x76325410] }
  0x2b   : > { %v167_v2 = vunpack.c.l.s4 %v481_v1  ;;  %v162_v6 = vcombine.high %v297_v5, %v297_v5  ;;  %s150_s22 = scalar_lea.vmem [#allocation5], %s295_s15  ;;  %s305_s24 = sshll.u32 %s470_s9, 7  ;;  %v482_v10 = vmov 0.0  }
  0x2c   : > { %v170_v4 = vshrl.u32 %v169_v0, 7  ;;  %s203_s23 = sshll.u32 %s150_s22, 4  ;;  %s201_s26 = scalar_lea.hbm %s629_s1, %s305_s24  ;;  %s204_s23 = int_to_ptr.vmem [resolvable:$true] %s203_s23 }
  0x2d   : > { %v168_v3 = vunpack.c.0.s8 %v167_v2  ;;  %v165_v8 = vcombine.low %v297_v5, %v162_v6  ;;  %s187_s27 = scalar_lea.sflag [#allocation4], %s580_s13  ;;  %s398_s28 = scalar_lea.vmem %s204_s23, 128 }
  0x2e   : > { %p399_p8 = scmp.ne.s32.totalorder %s204_s23, %s398_s28  ;;  %s483_s29 = smov [#allocation5]  }
  0x2f   : > { %v171_v7 = vsub.s32 %v168_v3, %v170_v4  ;;  %s402_s30 = sshll.u32 %s483_s29, 4  ;;  %s403_s30 = int_to_ptr.vmem [resolvable:$false] %s402_s30 }
  0x30   : > { %p400_p11 = pnand %p399_p8, %p545_p9  ;;  %s404_s2 = scalar_lea.vmem %s403_s30, 256 }
  0x31   : > { %v172_v9 = vrot.slane %v165_v8, %v171_v7  ;;  %p405_p0 = scmp.lt.s32.totalorder %s204_s23, %s403_s30  ;;  %p406_p1 = scmp.lt.s32.totalorder %s404_s2, %s398_s28 }
  0x32   : > { %p401_p12 = pneg %p400_p11 }
  0x33   : > { %v173_v11 = vcombine.high %v172_v9, %v482_v10  ;;  %p407_p2 = por %p406_p1, %p405_p0 }
  0x35   : > { %v176_v12 = vcombine.low %v172_v9, %v173_v11  ;;  %p408_p3 = pnand %p407_p2, %p401_p12 }
  0x37   : > { %298 = vst.sshfl [vmem:[%s150_s22] sm:$0xff pattern:$0x76325410] %v176_v12 }
  0x38   : > { %411 = shalt.err (!%p408_p3)
}
  0x39   : > { %s412_s9 = scalar_lea.hbm %s201_s26, 128  ;;  %s416_s5 = scalar_lea.hbm %s629_s1, 256 }
  0x3a   : > { %p413_p5 = scmp.ne.s32.totalorder %s201_s26, %s412_s9  ;;  %p417_p10 = scmp.lt.s32.totalorder %s201_s26, %s629_s1 }
  0x3b   : > { %p418_p4 = scmp.lt.s32.totalorder %s416_s5, %s412_s9 }
  0x3c   : > { %p414_p6 = pnand %p413_p5, %p545_p9 }
  0x3d   : > { %p419_p13 = por %p418_p4, %p417_p10 }
  0x3e   : > { %p415_p7 = pneg %p414_p6 }
  0x40   : > { %p420_p8 = pnand %p419_p13, %p415_p7 }
  0x42   : > { %423 = shalt.err (!%p420_p8)
}
  0x43   : > { %308 = dma.vmem_to_hbm [thread:$0]  (%p545_p9), %s204_s23, 128, %s201_s26, %s187_s27  }
  0x44 PF: > { %s215_s15 = sand.u32 1, %s458_s6   ;;  %p635_p11 = scmp.ne.s32.totalorder %s633_s21, 0 }
  0x45   : > { %p636_p12 = scmp.ge.s32.totalorder %s478_s11, 2  ;;  %s216_s16 = scalar_lea.sflag [#allocation4], %s215_s15 }
  0x47   : > { %p315_p0 = pnand %p636_p12, %p635_p11 }
  0x49   : > { %p316_p1 = pneg %p315_p0 }
  0x4b   : > { %453 = dma.done.wait (%p316_p1), %s216_s16, 128  }
  0x4c   : > { %455 = vsyncadd (%p316_p1), %s216_s16, 4294967168  ;;  %s17_s11 = sadd.s32 1, %s478_s11   ;;  %s637_s6 = smov %s462_s7 }
  0x4d   : > { %p14_p2 = scmp.ge.s32.totalorder %s17_s11, 4   ;;  %s638_s7 = smov %s466_s8 }
  0x4e   : > { %s639_s8 = smov %s550_s20  ;;  %s640_s9 = smov %s474_s10 }
  0x4f   : > { %s641_s10 = smov %s643_s14  ;;  %16 = sbr.rel (!%p14_p2) target bundleno = 6 (0x6), region = 69 }
  0x54   :  { %221 = vsyncpa [#allocation3], 1 }
  0x55   :  { %223 = vsyncpa [#allocation3 + $0x1], 1 }
  0x56   :  { %224 = vsyncpa [#allocation4], 1 }
  0x57   :  { %226 = vsyncpa [#allocation4 + $0x1], 1 }

</bundles_post_ra>
